<compile_context>
chip_gen: v7x
topology: tpu7x:2x2x1
jax: 0.10.0
libtpu: 0.0.40
codegen_flags: <defaults>
</compile_context>

<pallas_src>
import jax
import jax.numpy as jnp
from jax import lax
from jax.experimental import pallas as pl
from jax.experimental.pallas import tpu as pltpu


# ----------------------------- Pallas kernel ------------------------------ #
def withloss_d_kernel(fake_ref, real_ref, w1t_ref, bw_ref, b2_ref, out_ref,
                      acc_fake_ref, acc_real_ref):
    """fake_ref/real_ref: [B, tk] bf16 activations (flattened images)
       w1t_ref: [HID, tk] bf16 (lane-dense: F on the lane axis)
       bw_ref:  [2, HID] f32 (row 0 = b1, row 1 = w2 row)
       b2_ref:  (1,) f32 in SMEM
       out_ref: (4,) f32 in SMEM -> (d_loss, d_loss1, d_loss2, d_acc)
       acc_*_ref: [B, HID] f32 VMEM accumulators."""
    k = pl.program_id(0)

    @pl.when(k == 0)
    def _():
        acc_fake_ref[...] = jnp.zeros_like(acc_fake_ref)
        acc_real_ref[...] = jnp.zeros_like(acc_real_ref)

    # Partial first dense layer over this F-tile: A . B^T on the MXU
    # (bf16 inputs, f32 accumulation). MXU is <1% utilized at these dims --
    # the kernel is DMA/overhead bound, so no further matmul tuning is useful.
    dn = (((1,), (1,)), ((), ()))
    acc_fake_ref[...] += lax.dot_general(fake_ref[...], w1t_ref[...], dn,
                                         preferred_element_type=jnp.float32)
    acc_real_ref[...] += lax.dot_general(real_ref[...], w1t_ref[...], dn,
                                         preferred_element_type=jnp.float32)

    @pl.when(k == pl.num_programs(0) - 1)
    def _():
        b1 = bw_ref[0:1, :]       # [1, HID]
        w2_row = bw_ref[1:2, :]   # [1, HID]
        b2 = b2_ref[0]

        def head(acc):
            # bias + LeakyReLU(0.2) in f32, then N=1 dense as a VPU multiply
            # + cross-lane reduction (no second MXU pass).
            h = acc + b1
            h = jnp.where(h > 0.0, h, 0.2 * h)
            return jnp.sum(h * w2_row, axis=-1, keepdims=True) + b2  # [B, 1]

        logits_fake = head(acc_fake_ref[...])
        logits_real = head(acc_real_ref[...])
        b = logits_fake.shape[0]

        # BCEWithLogitsLoss(reduction='mean'):
        #   target=1 -> softplus(-x) ; target=0 -> softplus(x)
        def softplus(z):
            return jnp.maximum(z, 0.0) + jnp.log1p(jnp.exp(-jnp.abs(z)))

        d_loss1 = jnp.mean(softplus(-logits_real))   # D(real) vs ones
        d_loss2 = jnp.mean(softplus(logits_fake))    # D(fake) vs zeros
        d_loss = d_loss1 + d_loss2

        # sigmoid(x) >= 0.5 <=> x >= 0 ; sigmoid(x) <= 0.5 <=> x <= 0
        d_real_acc = (logits_real >= 0.0).astype(jnp.float32)
        d_fake_acc = (logits_fake <= 0.0).astype(jnp.float32)
        d_acc = (jnp.sum(d_real_acc) + jnp.sum(d_fake_acc)) / jnp.float32(2 * b)

        out_ref[0] = d_loss
        out_ref[1] = d_loss1
        out_ref[2] = d_loss2
        out_ref[3] = d_acc


# ------------------------------- Wrapper ----------------------------------- #
def _round_up(x, m):
    return ((x + m - 1) // m) * m


def _choose_f_tile(F, B, HID, *, vmem_budget_bytes=6 * 1024 * 1024):
    """Pick (tk, F_pad, nk).

    Per-step double-buffered VMEM bytes ~= tk * 4 * (2*B + HID)
    (fake + real bf16 tiles and the [HID, tk] bf16 w1t tile, x2 buffers).
    Only tile F when a single step would exceed the budget; budget is sized
    for v7x's 32 MiB scoped VMEM default with headroom."""
    bytes_per_tk = 4 * (2 * B + HID)
    tk_budget = max(128, (vmem_budget_bytes // bytes_per_tk) // 128 * 128)
    f128 = _round_up(F, 128)
    if f128 <= tk_budget:
        tk = f128                 # single grid step: no per-step overhead
    else:
        tk = tk_budget
    f_pad = _round_up(F, tk)      # zero-pad (zeros contribute nothing to dot)
    return tk, f_pad, f_pad // tk


def with_loss_d(hr, fake_patches, params):
    """hr, fake_patches: NCHW [B, C, H, W].
       Returns (d_loss, d_loss1, d_loss2, d_acc)."""
    w1, b1, w2, b2 = params
    B = hr.shape[0]
    F = w1.shape[0]
    HID = w1.shape[1]

    # Separate bf16 activation streams (no wrapper-side concat / extra HBM pass).
    x_fake = fake_patches.reshape(B, -1).astype(jnp.bfloat16)
    x_real = hr.reshape(B, -1).astype(jnp.bfloat16)

    # Lane-dense weights: [HID, F] with F on the lane axis.
    w1t = jnp.transpose(w1).astype(jnp.bfloat16)

    tk, f_pad, nk = _choose_f_tile(F, B, HID)
    if f_pad != F:
        pad = f_pad - F
        x_fake = jnp.pad(x_fake, ((0, 0), (0, pad)))
        x_real = jnp.pad(x_real, ((0, 0), (0, pad)))
        w1t = jnp.pad(w1t, ((0, 0), (0, pad)))

    # Pack b1 and the w2 row into one small resident f32 buffer.
    bw = jnp.concatenate(
        [b1.reshape(1, HID).astype(jnp.float32),
         w2.reshape(1, HID).astype(jnp.float32)], axis=0)          # [2, HID]
    b2_s = jnp.asarray(b2, jnp.float32).reshape((1,))               # SMEM scalar

    # Deeper buffering on the dominant w1t stream only when there are enough
    # K steps to hide DMA latency (matters most on v5e's lower HBM BW).
    if nk >= 4:
        w1t_spec = pl.BlockSpec((HID, tk), lambda k: (0, k),
                                pipeline_mode=pl.Buffered(3))
    else:
        w1t_spec = pl.BlockSpec((HID, tk), lambda k: (0, k))

    out = pl.pallas_call(
        withloss_d_kernel,
        out_shape=jax.ShapeDtypeStruct((4,), jnp.float32),
        grid_spec=pltpu.PrefetchScalarGridSpec(
            num_scalar_prefetch=0,
            grid=(nk,),
            in_specs=[
                pl.BlockSpec((B, tk), lambda k: (0, k)),            # fake acts
                pl.BlockSpec((B, tk), lambda k: (0, k)),            # real acts
                w1t_spec,                                           # w1.T tile
                pl.BlockSpec((2, HID), lambda k: (0, 0)),           # b1 + w2 row
                pl.BlockSpec(memory_space=pltpu.MemorySpace.SMEM),  # b2 scalar
            ],
            out_specs=pl.BlockSpec(memory_space=pltpu.MemorySpace.SMEM),
            scratch_shapes=[pltpu.VMEM((B, HID), jnp.float32),
                            pltpu.VMEM((B, HID), jnp.float32)],
        ),
        compiler_params=pltpu.CompilerParams(
            dimension_semantics=("arbitrary",),   # F is a reduction axis
        ),
    )(x_fake, x_real, w1t, bw, b2_s)

    return out[0], out[1], out[2], out[3]


# ------------------------- Pure-JAX reference ------------------------------ #
def with_loss_d_ref(hr, fake_patches, params):
    """Reference with the same precision policy (bf16 inputs/w1, f32 accumulate)."""
    w1, b1, w2, b2 = params
    B = hr.shape[0]
    w1b = w1.astype(jnp.bfloat16)

    def head(x):
        h = jnp.dot(x.astype(jnp.bfloat16), w1b,
                    preferred_element_type=jnp.float32)
        h = h + b1.reshape(1, -1).astype(jnp.float32)
        h = jnp.where(h > 0.0, h, 0.2 * h)
        return h @ w2.astype(jnp.float32) + b2.reshape(()).astype(jnp.float32)

    lf = head(fake_patches.reshape(B, -1))
    lr = head(hr.reshape(B, -1))

    sp = lambda z: jnp.maximum(z, 0.0) + jnp.log1p(jnp.exp(-jnp.abs(z)))
    d_loss1 = jnp.mean(sp(-lr))
    d_loss2 = jnp.mean(sp(lf))
    d_loss = d_loss1 + d_loss2

    d_real_acc = (jax.nn.sigmoid(lr).squeeze() >= 0.5).astype(jnp.float32)
    d_fake_acc = (jax.nn.sigmoid(lf).squeeze() <= 0.5).astype(jnp.float32)
    d_acc = jnp.mean(jnp.concatenate([d_real_acc, d_fake_acc], 0))
    return d_loss, d_loss1, d_loss2, d_acc


# --------------------------------- Main ------------------------------------ #
if __name__ == "__main__":
    import numpy as np

    B, C, H, W = 2, 4, 16, 16
    HID = 32
    F = C * H * W

    key = jax.random.PRNGKey(0)
    k_hr, k_fake, k_w1, k_b1, k_w2, k_b2 = jax.random.split(key, 6)

    hr = jax.random.normal(k_hr, (B, C, H, W), dtype=jnp.float32)
    fake_patches = jax.random.normal(k_fake, (B, C, H, W), dtype=jnp.float32)

    # Deterministic synthetic D_net parameters (kaiming-ish scaling).
    w1 = jax.random.normal(k_w1, (F, HID), dtype=jnp.float32) * (2.0 / F) ** 0.5
    b1 = jax.random.normal(k_b1, (1, HID), dtype=jnp.float32) * 0.01
    w2 = jax.random.normal(k_w2, (HID, 1), dtype=jnp.float32) * (2.0 / HID) ** 0.5
    b2 = jax.random.normal(k_b2, (1, 1), dtype=jnp.float32) * 0.01
    params = (w1, b1, w2, b2)

    out = with_loss_d(hr, fake_patches, params)
    out = jax.block_until_ready(out)

    ref = with_loss_d_ref(hr, fake_patches, params)
    for got, want in zip(out, ref):
        np.testing.assert_allclose(np.asarray(got), np.asarray(want),
                                   rtol=2e-3, atol=1e-4)

    print("KERNEL_OK")
</pallas_src>

<mosaic_0001>
module attributes {stable_mosaic.version = 11 : i64} {
  func.func @withloss_d_kernel(%arg0: i32, %arg1: memref<2x1024xbf16, #tpu.memory_space<vmem>>, %arg2: memref<2x1024xbf16, #tpu.memory_space<vmem>>, %arg3: memref<32x1024xbf16, #tpu.memory_space<vmem>>, %arg4: memref<2x32xf32, #tpu.memory_space<vmem>>, %arg5: memref<1xf32, #tpu.memory_space<smem>>, %arg6: memref<4xf32, #tpu.memory_space<smem>>, %arg7: memref<2x32xf32, #tpu.memory_space<vmem>>, %arg8: memref<2x32xf32, #tpu.memory_space<vmem>>) attributes {dimension_semantics = [#tpu.dimension_semantics<arbitrary>], iteration_bounds = array<i64: 1>, scalar_prefetch = 0 : i64, scratch_operands = 2 : i64, tpu.core_type = #tpu.core_type<tc>, window_params = [{transform_indices = @transform_0, window_bounds = array<i64: 2, 1024>}, {transform_indices = @transform_1, window_bounds = array<i64: 2, 1024>}, {transform_indices = @transform_2, window_bounds = array<i64: 32, 1024>}, {pipeline_mode = #tpu.pipeline_mode<synchronous>, transform_indices = @transform_3, window_bounds = array<i64: 2, 32>}, {transform_indices = @transform_4, window_bounds = array<i64: 1>}, {transform_indices = @transform_5, window_bounds = array<i64: 4>}]} {
    %c0_i32 = arith.constant 0 : i32
    %0 = arith.cmpi eq, %arg0, %c0_i32 : i32
    %1 = arith.extui %0 : i1 to i32
    %c0_i32_0 = arith.constant 0 : i32
    %2 = arith.cmpi ne, %1, %c0_i32_0 : i32
    scf.if %2 {
      %cst_19 = arith.constant 0.000000e+00 : f32
      %18 = vector.broadcast %cst_19 : f32 to vector<2x32xf32>
      %c0_20 = arith.constant 0 : index
      %c0_21 = arith.constant 0 : index
      %19 = vector.load %arg7[%c0_20, %c0_21] : memref<2x32xf32, #tpu.memory_space<vmem>>, vector<2x32xf32>
      tpu.vector_store %arg7[%c0_20, %c0_21], %18 {strides = array<i32>} : memref<2x32xf32, #tpu.memory_space<vmem>>, vector<2x32xf32>,
      %cst_22 = arith.constant 0.000000e+00 : f32
      %20 = vector.broadcast %cst_22 : f32 to vector<2x32xf32>
      %c0_23 = arith.constant 0 : index
      %c0_24 = arith.constant 0 : index
      %21 = vector.load %arg8[%c0_23, %c0_24] : memref<2x32xf32, #tpu.memory_space<vmem>>, vector<2x32xf32>
      tpu.vector_store %arg8[%c0_23, %c0_24], %20 {strides = array<i32>} : memref<2x32xf32, #tpu.memory_space<vmem>>, vector<2x32xf32>,
    } else {
    }
    %c0 = arith.constant 0 : index
    %c0_1 = arith.constant 0 : index
    %3 = vector.load %arg7[%c0, %c0_1] : memref<2x32xf32, #tpu.memory_space<vmem>>, vector<2x32xf32>
    %c0_2 = arith.constant 0 : index
    %c0_3 = arith.constant 0 : index
    %4 = vector.load %arg1[%c0_2, %c0_3] : memref<2x1024xbf16, #tpu.memory_space<vmem>>, vector<2x1024xbf16>
    %c0_4 = arith.constant 0 : index
    %c0_5 = arith.constant 0 : index
    %5 = vector.load %arg3[%c0_4, %c0_5] : memref<32x1024xbf16, #tpu.memory_space<vmem>>, vector<32x1024xbf16>
    %cst = arith.constant dense<0.000000e+00> : vector<2x32xf32>
    %6 = tpu.matmul %4, %5, %cst {dimension_numbers = #tpu.dot_dimension_numbers<[1], [1], [0], [0], [0, 0, 1, 0], [], []>} : vector<2x1024xbf16>, vector<32x1024xbf16>, vector<2x32xf32> -> vector<2x32xf32>
    %7 = arith.addf %3, %6 : vector<2x32xf32>
    %c0_6 = arith.constant 0 : index
    %c0_7 = arith.constant 0 : index
    %8 = vector.load %arg7[%c0_6, %c0_7] : memref<2x32xf32, #tpu.memory_space<vmem>>, vector<2x32xf32>
    tpu.vector_store %arg7[%c0_6, %c0_7], %7 {strides = array<i32>} : memref<2x32xf32, #tpu.memory_space<vmem>>, vector<2x32xf32>,
    %c0_8 = arith.constant 0 : index
    %c0_9 = arith.constant 0 : index
    %9 = vector.load %arg8[%c0_8, %c0_9] : memref<2x32xf32, #tpu.memory_space<vmem>>, vector<2x32xf32>
    %c0_10 = arith.constant 0 : index
    %c0_11 = arith.constant 0 : index
    %10 = vector.load %arg2[%c0_10, %c0_11] : memref<2x1024xbf16, #tpu.memory_space<vmem>>, vector<2x1024xbf16>
    %c0_12 = arith.constant 0 : index
    %c0_13 = arith.constant 0 : index
    %11 = vector.load %arg3[%c0_12, %c0_13] : memref<32x1024xbf16, #tpu.memory_space<vmem>>, vector<32x1024xbf16>
    %cst_14 = arith.constant dense<0.000000e+00> : vector<2x32xf32>
    %12 = tpu.matmul %10, %11, %cst_14 {dimension_numbers = #tpu.dot_dimension_numbers<[1], [1], [0], [0], [0, 0, 1, 0], [], []>} : vector<2x1024xbf16>, vector<32x1024xbf16>, vector<2x32xf32> -> vector<2x32xf32>
    %13 = arith.addf %9, %12 : vector<2x32xf32>
    %c0_15 = arith.constant 0 : index
    %c0_16 = arith.constant 0 : index
    %14 = vector.load %arg8[%c0_15, %c0_16] : memref<2x32xf32, #tpu.memory_space<vmem>>, vector<2x32xf32>
    tpu.vector_store %arg8[%c0_15, %c0_16], %13 {strides = array<i32>} : memref<2x32xf32, #tpu.memory_space<vmem>>, vector<2x32xf32>,
    %c0_i32_17 = arith.constant 0 : i32
    %15 = arith.cmpi eq, %arg0, %c0_i32_17 : i32
    %16 = arith.extui %15 : i1 to i32
    %c0_i32_18 = arith.constant 0 : i32
    %17 = arith.cmpi ne, %16, %c0_i32_18 : i32
    scf.if %17 {
      %c0_19 = arith.constant 0 : index
      %c0_20 = arith.constant 0 : index
      %18 = vector.load %arg4[%c0_19, %c0_20] : memref<2x32xf32, #tpu.memory_space<vmem>>, vector<1x32xf32>
      %c1 = arith.constant 1 : index
      %c0_21 = arith.constant 0 : index
      %19 = vector.load %arg4[%c1, %c0_21] : memref<2x32xf32, #tpu.memory_space<vmem>>, vector<1x32xf32>
      %c0_22 = arith.constant 0 : index
      %20 = memref.load %arg5[%c0_22] : memref<1xf32, #tpu.memory_space<smem>>
      %c0_23 = arith.constant 0 : index
      %c0_24 = arith.constant 0 : index
      %21 = vector.load %arg7[%c0_23, %c0_24] : memref<2x32xf32, #tpu.memory_space<vmem>>, vector<2x32xf32>
      %22 = vector.broadcast %18 : vector<1x32xf32> to vector<2x32xf32>
      %23 = arith.addf %21, %22 : vector<2x32xf32>
      %cst_25 = arith.constant 0.000000e+00 : f32
      %24 = vector.broadcast %cst_25 : f32 to vector<2x32xf32>
      %25 = arith.cmpf ogt, %23, %24 : vector<2x32xf32>
      %cst_26 = arith.constant 2.000000e-01 : f32
      %26 = vector.broadcast %cst_26 : f32 to vector<2x32xf32>
      %27 = arith.mulf %26, %23 : vector<2x32xf32>
      %28 = arith.select %25, %23, %27 : vector<2x32xi1>, vector<2x32xf32>
      %29 = vector.broadcast %19 : vector<1x32xf32> to vector<2x32xf32>
      %30 = arith.mulf %28, %29 : vector<2x32xf32>
      %cst_27 = arith.constant dense<0.000000e+00> : vector<2xf32>
      %31 = vector.multi_reduction <add>, %30, %cst_27 [1] : vector<2x32xf32> to vector<2xf32>
      %32 = vector.shape_cast %31 : vector<2xf32> to vector<2x1xf32>
      %33 = vector.broadcast %20 : f32 to vector<2x1xf32>
      %34 = arith.addf %32, %33 : vector<2x1xf32>
      %c0_28 = arith.constant 0 : index
      %c0_29 = arith.constant 0 : index
      %35 = vector.load %arg8[%c0_28, %c0_29] : memref<2x32xf32, #tpu.memory_space<vmem>>, vector<2x32xf32>
      %36 = vector.broadcast %18 : vector<1x32xf32> to vector<2x32xf32>
      %37 = arith.addf %35, %36 : vector<2x32xf32>
      %cst_30 = arith.constant 0.000000e+00 : f32
      %38 = vector.broadcast %cst_30 : f32 to vector<2x32xf32>
      %39 = arith.cmpf ogt, %37, %38 : vector<2x32xf32>
      %cst_31 = arith.constant 2.000000e-01 : f32
      %40 = vector.broadcast %cst_31 : f32 to vector<2x32xf32>
      %41 = arith.mulf %40, %37 : vector<2x32xf32>
      %42 = arith.select %39, %37, %41 : vector<2x32xi1>, vector<2x32xf32>
      %43 = vector.broadcast %19 : vector<1x32xf32> to vector<2x32xf32>
      %44 = arith.mulf %42, %43 : vector<2x32xf32>
      %cst_32 = arith.constant dense<0.000000e+00> : vector<2xf32>
      %45 = vector.multi_reduction <add>, %44, %cst_32 [1] : vector<2x32xf32> to vector<2xf32>
      %46 = vector.shape_cast %45 : vector<2xf32> to vector<2x1xf32>
      %47 = vector.broadcast %20 : f32 to vector<2x1xf32>
      %48 = arith.addf %46, %47 : vector<2x1xf32>
      %cst_33 = arith.constant 0.000000e+00 : f32
      %49 = vector.broadcast %cst_33 : f32 to vector<2x1xf32>
      %50 = arith.subf %49, %48 : vector<2x1xf32>
      %cst_34 = arith.constant 0.000000e+00 : f32
      %51 = vector.broadcast %cst_34 : f32 to vector<2x1xf32>
      %52 = arith.maximumf %50, %51 : vector<2x1xf32>
      %53 = math.absf %50 : vector<2x1xf32>
      %cst_35 = arith.constant 0.000000e+00 : f32
      %54 = vector.broadcast %cst_35 : f32 to vector<2x1xf32>
      %55 = arith.subf %54, %53 : vector<2x1xf32>
      %56 = math.exp %55 : vector<2x1xf32>
      %57 = math.log1p %56 : vector<2x1xf32>
      %58 = arith.addf %52, %57 : vector<2x1xf32>
      %59 = vector.shape_cast %58 : vector<2x1xf32> to vector<1x2x1xf32>
      %cst_36 = arith.constant dense<0.000000e+00> : vector<1xf32>
      %60 = vector.multi_reduction <add>, %59, %cst_36 [1, 2] : vector<1x2x1xf32> to vector<1xf32>
      %61 = vector.shape_cast %60 : vector<1xf32> to vector<1x1x1xf32>
      %62 = vector.extract %61[0, 0, 0] : f32 from vector<1x1x1xf32>
      %cst_37 = arith.constant 2.000000e+00 : f32
      %63 = arith.divf %62, %cst_37 : f32
      %cst_38 = arith.constant 0.000000e+00 : f32
      %64 = vector.broadcast %cst_38 : f32 to vector<2x1xf32>
      %65 = arith.maximumf %34, %64 : vector<2x1xf32>
      %66 = math.absf %34 : vector<2x1xf32>
      %cst_39 = arith.constant 0.000000e+00 : f32
      %67 = vector.broadcast %cst_39 : f32 to vector<2x1xf32>
      %68 = arith.subf %67, %66 : vector<2x1xf32>
      %69 = math.exp %68 : vector<2x1xf32>
      %70 = math.log1p %69 : vector<2x1xf32>
      %71 = arith.addf %65, %70 : vector<2x1xf32>
      %72 = vector.shape_cast %71 : vector<2x1xf32> to vector<1x2x1xf32>
      %cst_40 = arith.constant dense<0.000000e+00> : vector<1xf32>
      %73 = vector.multi_reduction <add>, %72, %cst_40 [1, 2] : vector<1x2x1xf32> to vector<1xf32>
      %74 = vector.shape_cast %73 : vector<1xf32> to vector<1x1x1xf32>
      %75 = vector.extract %74[0, 0, 0] : f32 from vector<1x1x1xf32>
      %cst_41 = arith.constant 2.000000e+00 : f32
      %76 = arith.divf %75, %cst_41 : f32
      %77 = arith.addf %63, %76 : f32
      %cst_42 = arith.constant 0.000000e+00 : f32
      %78 = vector.broadcast %cst_42 : f32 to vector<2x1xf32>
      %79 = arith.cmpf oge, %48, %78 : vector<2x1xf32>
      %80 = arith.extui %79 : vector<2x1xi1> to vector<2x1xi32>
      %81 = arith.sitofp %80 : vector<2x1xi32> to vector<2x1xf32>
      %cst_43 = arith.constant 0.000000e+00 : f32
      %82 = vector.broadcast %cst_43 : f32 to vector<2x1xf32>
      %83 = arith.cmpf ole, %34, %82 : vector<2x1xf32>
      %84 = arith.extui %83 : vector<2x1xi1> to vector<2x1xi32>
      %85 = arith.sitofp %84 : vector<2x1xi32> to vector<2x1xf32>
      %86 = vector.shape_cast %81 : vector<2x1xf32> to vector<1x2x1xf32>
      %cst_44 = arith.constant dense<0.000000e+00> : vector<1xf32>
      %87 = vector.multi_reduction <add>, %86, %cst_44 [1, 2] : vector<1x2x1xf32> to vector<1xf32>
      %88 = vector.shape_cast %87 : vector<1xf32> to vector<1x1x1xf32>
      %89 = vector.extract %88[0, 0, 0] : f32 from vector<1x1x1xf32>
      %90 = vector.shape_cast %85 : vector<2x1xf32> to vector<1x2x1xf32>
      %cst_45 = arith.constant dense<0.000000e+00> : vector<1xf32>
      %91 = vector.multi_reduction <add>, %90, %cst_45 [1, 2] : vector<1x2x1xf32> to vector<1xf32>
      %92 = vector.shape_cast %91 : vector<1xf32> to vector<1x1x1xf32>
      %93 = vector.extract %92[0, 0, 0] : f32 from vector<1x1x1xf32>
      %94 = arith.addf %89, %93 : f32
      %cst_46 = arith.constant 4.000000e+00 : f32
      %95 = arith.divf %94, %cst_46 : f32
      %c0_47 = arith.constant 0 : index
      %96 = memref.load %arg6[%c0_47] : memref<4xf32, #tpu.memory_space<smem>>
      memref.store %77, %arg6[%c0_47] : memref<4xf32, #tpu.memory_space<smem>>
      %c1_48 = arith.constant 1 : index
      %97 = memref.load %arg6[%c1_48] : memref<4xf32, #tpu.memory_space<smem>>
      memref.store %63, %arg6[%c1_48] : memref<4xf32, #tpu.memory_space<smem>>
      %c2 = arith.constant 2 : index
      %98 = memref.load %arg6[%c2] : memref<4xf32, #tpu.memory_space<smem>>
      memref.store %76, %arg6[%c2] : memref<4xf32, #tpu.memory_space<smem>>
      %c3 = arith.constant 3 : index
      %99 = memref.load %arg6[%c3] : memref<4xf32, #tpu.memory_space<smem>>
      memref.store %95, %arg6[%c3] : memref<4xf32, #tpu.memory_space<smem>>
    } else {
    }
    return
  }
  func.func @transform_0(%arg0: i32) -> (i32, i32) {
    %c0_i32 = arith.constant 0 : i32
    %c0_i32_0 = arith.constant 0 : i32
    return %c0_i32, %arg0 : i32, i32
  }
  func.func @transform_1(%arg0: i32) -> (i32, i32) {
    %c0_i32 = arith.constant 0 : i32
    %c0_i32_0 = arith.constant 0 : i32
    return %c0_i32, %arg0 : i32, i32
  }
  func.func @transform_2(%arg0: i32) -> (i32, i32) {
    %c0_i32 = arith.constant 0 : i32
    %c0_i32_0 = arith.constant 0 : i32
    return %c0_i32, %arg0 : i32, i32
  }
  func.func @transform_3(%arg0: i32) -> (i32, i32) {
    %c0_i32 = arith.constant 0 : i32
    %c0_i32_0 = arith.constant 0 : i32
    %c0_i32_1 = arith.constant 0 : i32
    return %c0_i32, %c0_i32_0 : i32, i32
  }
  func.func @transform_4(%arg0: i32) -> i32 {
    %c0_i32 = arith.constant 0 : i32
    %c0_i32_0 = arith.constant 0 : i32
    return %c0_i32 : i32
  }
  func.func @transform_5(%arg0: i32) -> i32 {
    %c0_i32 = arith.constant 0 : i32
    %c0_i32_0 = arith.constant 0 : i32
    return %c0_i32 : i32
  }
}

</mosaic_0001>

<bundles_post_ra>
// kernel: tpu_custom_call.1
= control target key start
LH: loop header
LB: loop body
LE: loop exit
PB: predicated region body
PF: predicated region fallthrough
CT: control target
= control target key end

     0   :  { %11 = vsyncpa [#allocation6], 0  ;;  %s1138_s0 = inlined_call_operand.hbm [shape: bf16[2,1024], index: 0, kind: input, shape index: {}]   ;;  %s1139_s1 = inlined_call_operand.hbm [shape: bf16[2,1024], index: 1, kind: input, shape index: {}]   ;;  %s1140_s2 = inlined_call_operand.hbm [shape: bf16[32,1024], index: 2, kind: input, shape index: {}]   ;;  %s1141_s3 = inlined_call_operand.vmem [shape: f32[2,32], index: 3, kind: input, shape index: {}]   ;;  %s1142_s4 = inlined_call_operand.<no memory space> [shape: f32[1], index: 4, kind: input, shape index: {}]   ;;  %s1143_s5 = inlined_call_operand.hbm [shape: f32[4], index: 5, kind: output, shape index: {}]  }
   0x1   :  { %12 = vsyncpa [#allocation9], 0 }
   0x2   :  { %13 = vsyncpa [#allocation7], 0  ;;  %s995_s18 = smov [#allocation8]   ;;  %s996_s20 = smov [#allocation5]  }
   0x3   :  { %s30_s19 = sshll.u32 %s995_s18, 4  ;;  %s20_s21 = sshll.u32 %s996_s20, 4  ;;  %s31_s19 = int_to_ptr.vmem [resolvable:$true] %s30_s19  ;;  %s21_s21 = int_to_ptr.vmem [resolvable:$true] %s20_s21 }
   0x4   :  { %s913_s24 = scalar_lea.hbm %s1139_s1, 128 }
   0x5   :  { %p914_p0 = scmp.ne.s32.totalorder %s1139_s1, %s913_s24  ;;  %p917_p1 = scmp.lt.u32.totalorder %s913_s24, %s1139_s1 }
   0x7   :  { %p919_p2 = pnand %p917_p1, %p914_p0 }
   0x9   :  { %922 = shalt.err (!%p919_p2)
}
   0xa   :  { %s923_s29 = scalar_lea.vmem %s31_s19, 128  ;;  %p928_p4 = scmp.lt.s32.totalorder %s31_s19, %s31_s19 }
   0xb   :  { %p924_p3 = scmp.ne.s32.totalorder %s31_s19, %s923_s29  ;;  %p929_p5 = scmp.lt.s32.totalorder %s923_s29, %s923_s29 }
   0xd   :  { %p930_p6 = por %p929_p5, %p928_p4 }
   0xf   :  { %p931_p7 = pnand %p930_p6, %p924_p3 }
  0x11   :  { %934 = shalt.err (!%p931_p7)
}
  0x12   :  { %33 = dma.hbm_to_vmem [thread:$0]  %s1139_s1, 128, %s31_s19, [#allocation9]  }
  0x13   :  { %s935_s9 = scalar_lea.hbm %s1138_s0, 128 }
  0x14   :  { %p936_p8 = scmp.ne.s32.totalorder %s1138_s0, %s935_s9  ;;  %p939_p9 = scmp.lt.u32.totalorder %s935_s9, %s1138_s0 }
  0x16   :  { %p941_p10 = pnand %p939_p9, %p936_p8 }
  0x18   :  { %944 = shalt.err (!%p941_p10)
}
  0x19   :  { %s945_s14 = scalar_lea.vmem %s21_s21, 128  ;;  %p950_p12 = scmp.lt.s32.totalorder %s21_s21, %s21_s21 }
  0x1a   :  { %p946_p11 = scmp.ne.s32.totalorder %s21_s21, %s945_s14  ;;  %p951_p13 = scmp.lt.s32.totalorder %s945_s14, %s945_s14 }
  0x1c   :  { %p952_p0 = por %p951_p13, %p950_p12 }
  0x1e   :  { %p953_p1 = pnand %p952_p0, %p946_p11 }
  0x20   :  { %956 = shalt.err (!%p953_p1)
}
  0x21   :  { %23 = dma.hbm_to_vmem [thread:$0]  %s1138_s0, 128, %s21_s21, [#allocation6]  }
  0x22   :  { %s997_s16 = smov [#allocation10]   ;;  %s957_s20 = scalar_lea.hbm %s1140_s2, 2048 }
  0x23   :  { %s39_s17 = sshll.u32 %s997_s16, 4  ;;  %p958_p2 = scmp.ne.s32.totalorder %s1140_s2, %s957_s20  ;;  %s40_s17 = int_to_ptr.vmem [resolvable:$true] %s39_s17 }
  0x24   :  { %p961_p3 = scmp.lt.u32.totalorder %s957_s20, %s1140_s2 }
  0x26   :  { %p963_p4 = pnand %p961_p3, %p958_p2 }
  0x28   :  { %966 = shalt.err (!%p963_p4)
}
  0x29   :  { %s967_s26 = scalar_lea.vmem %s40_s17, 2048  ;;  %p972_p6 = scmp.lt.s32.totalorder %s40_s17, %s40_s17 }
  0x2a   :  { %p968_p5 = scmp.ne.s32.totalorder %s40_s17, %s967_s26  ;;  %p973_p7 = scmp.lt.s32.totalorder %s967_s26, %s967_s26 }
  0x2c   :  { %p974_p8 = por %p973_p7, %p972_p6 }
  0x2e   :  { %p975_p9 = pnand %p974_p8, %p968_p5 }
  0x30   :  { %978 = shalt.err (!%p975_p9)
}
  0x31   :  { %s998_s0 = smov 512   ;;  %s999_s21 = smov 32  }
  0x32   :  { %45 = dma.hbm_to_vmem [thread:$0]  %s1140_s2, 2048, %s40_s17, [#allocation9], %s998_s0, %s998_s0, %s999_s21  }
  0x33   :  { %989 = dma.done.wait [#allocation6], 128  }
  0x34   :  { %990 = vsyncadd [#allocation6], 4294967168 }
  0x35   :  { %991 = dma.done.wait [#allocation9], 2176  }
  0x36   :  { %992 = vsyncadd [#allocation9], 4294965120  ;;  %v90_v0 = vlaneseq  ;;  %v1000_v1 = vmov 1966171168   ;;  %v69_v6 = vld [vmem:[#allocation10] sm:$0xff]  ;;  %v70_v8 = vld [vmem:[#allocation10 + $0x8] sm:$0xff] }
  0x37   :  { %v88_v2 = vunpack.c.l.s4 %v1000_v1  ;;  %v73_v7 = vld [vmem:[#allocation10 + $0x20] sm:$0xff]  ;;  %v74_v10 = vld [vmem:[#allocation10 + $0x28] sm:$0xff]  ;;  %v68_v19 = vld [vmem:[#allocation5] sm:$0xff]  ;;  %vm64_vm0 = vcmask 254976   ;;  %vm755_vm3 = vcmask 1024   ;;  %s979_s17 = scalar_lea.hbm %s1143_s5, 16 }
  0x38   :  { %v91_v3 = vshrl.u32 %v90_v0, 7  ;;  %v1071_v9 = vcombine.high %v69_v6, %v73_v7  ;;  %v1073_v11 = vcombine.low %v69_v6, %v73_v7  ;;  %v77_v12 = vld [vmem:[#allocation10 + $0x40] sm:$0xff]  ;;  %v854_v14 = vcombine.high %v70_v8, %v74_v10  ;;  %v78_v17 = vld [vmem:[#allocation10 + $0x48] sm:$0xff]  ;;  %v71_v24 = vld [vmem:[#allocation10 + $0x10] sm:$0xff]  ;;  %p980_p10 = scmp.ne.s32.totalorder %s1143_s5, %s979_s17  ;;  %p983_p11 = scmp.lt.u32.totalorder %s979_s17, %s1143_s5 }
  0x39   :  { %v89_v4 = vunpack.c.0.s8 %v88_v2  ;;  %v81_v13 = vld [vmem:[#allocation10 + $0x60] sm:$0xff]  ;;  %v1075_v15 = vcombine.low %v70_v8, %v74_v10  ;;  %v82_v18 = vld [vmem:[#allocation10 + $0x68] sm:$0xff]  ;;  %v86_v21 = vcombine.high %v68_v19, %v68_v19  ;;  %v75_v25 = vld [vmem:[#allocation10 + $0x30] sm:$0xff]  ;;  %v1001_v2 = vmov 0.0  }
  0x3a   :  { %v1077_v16 = vcombine.high %v77_v12, %v81_v13  ;;  %223 = vmatprep.subr.bf16.mxu0 %v1071_v9  ;;  %v1080_v20 = vcombine.high %v78_v17, %v82_v18  ;;  %263 = vmatprep.subr.bf16.mxu1 %v854_v14  ;;  %v72_v27 = vld [vmem:[#allocation10 + $0x18] sm:$0xff]  ;;  %v859_v30 = vcombine.low %v77_v12, %v81_v13  ;;  %v79_v37 = vld [vmem:[#allocation10 + $0x50] sm:$0xff]  ;;  %p985_p12 = pnand %p983_p11, %p980_p10 }
  0x3b   :  { %v1069_v5 = vsub.s32 %v89_v4, %v91_v3  ;;  %224 = vmatpush1.bf16.xpose.msra.mxu0 %v1073_v11  ;;  %264 = vmatpush1.bf16.xpose.msra.mxu1 %v1075_v15  ;;  %v76_v28 = vld [vmem:[#allocation10 + $0x38] sm:$0xff]  ;;  %v861_v31 = vcombine.low %v78_v17, %v82_v18  ;;  %v856_v33 = vcombine.high %v71_v24, %v75_v25  ;;  %v83_v38 = vld [vmem:[#allocation10 + $0x70] sm:$0xff] }
  0x3c   :  { %225 = vmatprep.subr.bf16.mxu0 %v1077_v16  ;;  %265 = vmatprep.subr.bf16.mxu1 %v1080_v20  ;;  %v858_v34 = vcombine.high %v72_v27, %v76_v28  ;;  %v80_v39 = vld [vmem:[#allocation10 + $0x58] sm:$0xff]  ;;  %v855_v43 = vcombine.low %v71_v24, %v75_v25  ;;  %v857_v44 = vcombine.low %v72_v27, %v76_v28 }
  0x3d   :  { %v93_v22 = vrot.slane %v68_v19, %v1069_v5  ;;  %v100_v29 = vrot.slane %v86_v21, %v1069_v5  ;;  %v84_v40 = vld [vmem:[#allocation10 + $0x78] sm:$0xff]  ;;  %v864_v45 = vcombine.high %v79_v37, %v83_v38  ;;  %v863_v50 = vcombine.low %v79_v37, %v83_v38  ;;  %65 = vst.msk [vmem:[#allocation2] sm:$0x3] %vm64_vm0, %v1001_v2 }
  0x3e   :  { %v866_v46 = vcombine.high %v80_v39, %v84_v40  ;;  %v387_v48 = vld [vmem:[#allocation8] sm:$0xff]  ;;  %v865_v51 = vcombine.low %v80_v39, %v84_v40  ;;  %66 = vst.msk [vmem:[#allocation3] sm:$0x3] %vm64_vm0, %v1001_v2 }
  0x3f   :  { %v101_v23 = vcombine.high %v93_v22, %v93_v22  ;;  %v102_v35 = vcombine.high %v100_v29, %v100_v29  ;;  %v109_v36 = vrot.slane %v93_v22, %v1069_v5  ;;  %v412_v49 = vrot.slane %v387_v48, %v1069_v5 }
  0x40   :  { %v116_v53 = vrot.slane %v100_v29, %v1069_v5  ;;  %v405_v57 = vcombine.high %v387_v48, %v387_v48 }
  0x41   :  { %v123_v26 = vrot.slane %v101_v23, %v1069_v5  ;;  %v130_v41 = vrot.slane %v102_v35, %v1069_v5  ;;  %v131_v42 = vcombine.high %v109_v36, %v109_v36  ;;  %v420_v52 = vcombine.high %v412_v49, %v412_v49 }
  0x42   :  { %v132_v55 = vcombine.high %v116_v53, %v116_v53  ;;  %v419_v58 = vrot.slane %v405_v57, %v1069_v5  ;;  %v428_v60 = vrot.slane %v412_v49, %v1069_v5 }
  0x43   :  { %255 = vmatprep.mubr.bf16.mxu0 %v123_v26  ;;  %v133_v32 = vcombine.high %v123_v26, %v123_v26  ;;  %226 = vmatpush1.bf16.xpose.msra.mxu0 %v859_v30  ;;  %v134_v47 = vcombine.high %v130_v41, %v130_v41  ;;  %v442_v54 = vrot.slane %v420_v52, %v1069_v5  ;;  %v884_v52 = vld [vmem:[%s1141_s3 + $0x1] ss:$0 sm:$0xff] }
  0x44   :  { %266 = vmatpush1.bf16.xpose.msra.mxu1 %v861_v31  ;;  %303 = vmatprep.subr.bf16.mxu0 %v856_v33  ;;  %v421_v59 = vcombine.high %v419_v58, %v419_v58  ;;  %v450_v62 = vcombine.high %v428_v60, %v428_v60  ;;  %v435_v0 = vrot.slane %v419_v58, %v1069_v5 }
  0x45   :  { %295 = vmatprep.mubr.bf16.mxu1 %v133_v32  ;;  %343 = vmatprep.subr.bf16.mxu1 %v858_v34  ;;  %v452_v56 = vcombine.high %v442_v54, %v442_v54  ;;  %v386_v37 = vld [vmem:[#allocation3] sm:$0x3] }
  0x46   :  { %v449_v61 = vrot.slane %v421_v59, %v1069_v5  ;;  %v451_v1 = vcombine.high %v435_v0, %v435_v0  ;;  %v727_v59 = vstv %s1142_s4 }
  0x48   :  { %v453_v63 = vcombine.high %v449_v61, %v449_v61 }
  0x4a   :  { %256 = vmatmul.mubr.bf16.vlgmr.msra.gmra.mrb[0].mxu0 %v109_v36 }
  0x4b   :  { %296 = vmatmul.mubr.bf16.vlgmr.msra.gmra.mrb[0].mxu1 %v131_v42  ;;  %304 = vmatpush1.bf16.xpose.msra.mxu0 %v855_v43 }
  0x4c   :  { %344 = vmatpush1.bf16.xpose.msra.mxu1 %v857_v44  ;;  %305 = vmatprep.subr.bf16.mxu0 %v864_v45 }
  0x4d   :  { %345 = vmatprep.subr.bf16.mxu1 %v866_v46  ;;  %335 = vmatprep.mubr.bf16.mxu0 %v130_v41 }
  0x4e   :  { %375 = vmatprep.mubr.bf16.mxu1 %v134_v47 }
  0x53   :  { %306 = vmatpush1.bf16.xpose.msra.mxu0 %v863_v50 }
  0x54   :  { %346 = vmatpush1.bf16.xpose.msra.mxu1 %v865_v51  ;;  %542 = vmatprep.subr.bf16.mxu0 %v1071_v9 }
  0x55   :  { %582 = vmatprep.subr.bf16.mxu1 %v854_v14 }
  0x5a   :  { %336 = vmatmul.mubr.bf16.vlgmr.msra.gmra.mrb[4].mxu0 %v116_v53 }
  0x5b   :  { %376 = vmatmul.mubr.bf16.vlgmr.msra.gmra.mrb[4].mxu1 %v132_v55  ;;  %543 = vmatpush1.bf16.xpose.msra.mxu0 %v1073_v11 }
  0x5c   :  { %583 = vmatpush1.bf16.xpose.msra.mxu1 %v1075_v15  ;;  %544 = vmatprep.subr.bf16.mxu0 %v1077_v16  ;;  %v67_v16 = vld [vmem:[#allocation2] sm:$0x3] }
  0x5d   :  { %584 = vmatprep.subr.bf16.mxu1 %v1080_v20  ;;  %574 = vmatprep.mubr.bf16.mxu0 %v442_v54 }
  0x5e   :  { %614 = vmatprep.mubr.bf16.mxu1 %v452_v56 }
  0x63   :  { %545 = vmatpush1.bf16.xpose.msra.mxu0 %v859_v30 }
  0x64   :  { %585 = vmatpush1.bf16.xpose.msra.mxu1 %v861_v31  ;;  %622 = vmatprep.subr.bf16.mxu0 %v856_v33 }
  0x65   :  { %662 = vmatprep.subr.bf16.mxu1 %v858_v34 }
  0x6a   :  { %575 = vmatmul.mubr.bf16.vlgmr.msra.gmra.mrb[8].mxu0 %v428_v60 }
  0x6b   :  { %615 = vmatmul.mubr.bf16.vlgmr.msra.gmra.mrb[8].mxu1 %v450_v62  ;;  %623 = vmatpush1.bf16.xpose.msra.mxu0 %v855_v43 }
  0x6c   :  { %663 = vmatpush1.bf16.xpose.msra.mxu1 %v857_v44  ;;  %624 = vmatprep.subr.bf16.mxu0 %v864_v45  ;;  %v883_v45 = vld [vmem:[%s1141_s3] ss:$0 sm:$0xff] }
  0x6d   :  { %664 = vmatprep.subr.bf16.mxu1 %v866_v46  ;;  %654 = vmatprep.mubr.bf16.mxu0 %v449_v61 }
  0x6e   :  { %694 = vmatprep.mubr.bf16.mxu1 %v453_v63 }
  0x73   :  { %625 = vmatpush1.bf16.xpose.msra.mxu0 %v863_v50 }
  0x74   :  { %665 = vmatpush1.bf16.xpose.msra.mxu1 %v865_v51 }
  0x7a   :  { %655 = vmatmul.mubr.bf16.vlgmr.msra.gmra.mrb[12].mxu0 %v435_v0 }
  0x7b   :  { %695 = vmatmul.mubr.bf16.vlgmr.msra.gmra.mrb[12].mxu1 %v451_v1 }
 0x11d   :  { %v257_v3 = vpop.f32.mrb[0].mxu0 }
 0x11e   :  { %v297_v4 = vpop.f32.mrb[0].mxu1  ;;  %v259_v6 = vpop.f32.mrb[1].mxu0 }
 0x11f   :  { %v298_v7 = vadd.f32 %v297_v4, %v257_v3  ;;  %v299_v8 = vpop.f32.mrb[1].mxu1  ;;  %v260_v9 = vpop.f32.mrb[2].mxu0 }
 0x120   :  { %v300_v10 = vpop.f32.mrb[2].mxu1  ;;  %v261_v5 = vpop.f32.mrb[3].mxu0 }
 0x121   :  { %v301_v11 = vpop.f32.mrb[3].mxu1 }
 0x12d   :  { %v337_v12 = vpop.f32.mrb[4].mxu0 }
 0x12e   :  { %v338_v13 = vadd.f32 %v337_v12, %v298_v7  ;;  %v377_v14 = vpop.f32.mrb[4].mxu1  ;;  %v339_v15 = vpop.f32.mrb[5].mxu0 }
 0x12f   :  { %v379_v17 = vpop.f32.mrb[5].mxu1  ;;  %v340_v18 = vpop.f32.mrb[6].mxu0 }
 0x130   :  { %v378_v19 = vadd.f32 %v377_v14, %v338_v13  ;;  %v380_v20 = vpop.f32.mrb[6].mxu1  ;;  %v341_v21 = vpop.f32.mrb[7].mxu0 }
 0x131   :  { %v381_v22 = vpop.f32.mrb[7].mxu1 }
 0x132   :  { %v383_v23 = vadd.f32 %v378_v19, %v67_v16 }
 0x134   :  { %385 = vst.msk [vmem:[#allocation2] sm:$0x3] %vm64_vm0, %v383_v23 }
 0x13b   :  { %v710_v46 = vld [vmem:[#allocation2] sm:$0x3] }
 0x13c   :  { %v715_v47 = vadd.f32 %v883_v45, %v710_v46 }
 0x13d   :  { %v576_v24 = vpop.f32.mrb[8].mxu0 }
 0x13e   :  { %v616_v25 = vpop.f32.mrb[8].mxu1  ;;  %v578_v26 = vpop.f32.mrb[9].mxu0  ;;  %v717_v50 = vmul.f32 0.2, %v715_v47  ;;  %vm716_vm1 = vcmp.gt.f32.partialorder %v715_v47, 0.0 }
 0x13f   :  { %v617_v27 = vadd.f32 %v616_v25, %v576_v24  ;;  %v618_v28 = vpop.f32.mrb[9].mxu1  ;;  %v579_v29 = vpop.f32.mrb[10].mxu0 }
 0x140   :  { %v619_v30 = vpop.f32.mrb[10].mxu1  ;;  %v580_v31 = vpop.f32.mrb[11].mxu0  ;;  %v718_v54 = vsel %vm716_vm1, %v715_v47, %v717_v50 }
 0x141   :  { %v620_v32 = vpop.f32.mrb[11].mxu1  ;;  %v723_v57 = vmul.f32 %v884_v52, %v718_v54 }
 0x143   :  { %v724_v58 = vsel %vm64_vm0, %v723_v57, 0.0 }
 0x14d   :  { %v656_v33 = vpop.f32.mrb[12].mxu0 }
 0x14e   :  { %v657_v34 = vadd.f32 %v656_v33, %v617_v27  ;;  %v696_v35 = vpop.f32.mrb[12].mxu1  ;;  %v658_v36 = vpop.f32.mrb[13].mxu0 }
 0x14f   :  { %v698_v38 = vpop.f32.mrb[13].mxu1  ;;  %v659_v39 = vpop.f32.mrb[14].mxu0 }
 0x150   :  { %v697_v40 = vadd.f32 %v696_v35, %v657_v34  ;;  %v699_v41 = vpop.f32.mrb[14].mxu1  ;;  %v660_v42 = vpop.f32.mrb[15].mxu0 }
 0x151   :  { %v700_v43 = vpop.f32.mrb[15].mxu1 }
 0x152   :  { %v702_v44 = vadd.f32 %v697_v40, %v386_v37 }
 0x154   :  { %703 = vst.msk [vmem:[#allocation3] sm:$0x3] %vm64_vm0, %v702_v44 }
 0x15b   :  { %v729_v48 = vld [vmem:[#allocation3] sm:$0x3] }
 0x15c   :  { %v730_v49 = vadd.f32 %v883_v45, %v729_v48 }
 0x15e   :  { %vm731_vm2 = vcmp.gt.f32.partialorder %v730_v49, 0.0  ;;  %v732_v51 = vmul.f32 0.2, %v730_v49 }
 0x160   :  { %v733_v53 = vsel %vm731_vm2, %v730_v49, %v732_v51 }
 0x161   :  { %v734_v55 = vmul.f32 %v884_v52, %v733_v53 }
 0x163   :  { %v735_v56 = vsel %vm64_vm0, %v734_v55, 0.0 }
 0x164   :  { %736 = vadd.xlane.f32.xlu0 %v735_v56 }
 0x168   :  { %725 = vadd.xlane.f32.xlu0 %v724_v58 }
 0x1f1   :  { %v737_v60 = vpop.xlane.xlu0 %736 }
 0x1f2   :  { %v738_v61 = vadd.f32 %v737_v60, %v727_v59 }
 0x1f4   :  { %v739_v62 = vsub.f32 0.0, %v738_v61  ;;  %vm798_vm4 = vcmp.ge.f32.partialorder %v738_v61, 0.0 }
 0x1f5   :  { %v726_v63 = vpop.xlane.xlu0 %725  ;;  %v885_v0 = vsel %vm798_vm4, 1.0, %v1001_v2 }
 0x1f6   :  { %v741_v1 = vand.u32 2147483647, %v739_v62  ;;  %v728_v3 = vadd.f32 %v727_v59, %v726_v63  ;;  %v804_v4 = vsel %vm755_vm3, %v885_v0, 0.0  ;;  %v740_v30 = vmax.f32 %v739_v62, 0.0 }
 0x1f7   :  { %805 = vadd.xlane.f32.xlu0 %v804_v4 }
 0x1f8   :  { %v742_v6 = vsub.f32 0.0, %v741_v1  ;;  %v770_v7 = vand.u32 2147483647, %v728_v3  ;;  %v769_v26 = vmax.f32 %v728_v3, 0.0  ;;  %vm801_vm7 = vcmp.le.f32.partialorder %v728_v3, 0.0 }
 0x1f9   :  { %v886_v34 = vsel %vm801_vm7, 1.0, %v1001_v2 }
 0x1fa   :  { %v743_v8 = vmul.f32 1.442695, %v742_v6  ;;  %v771_v9 = vsub.f32 0.0, %v770_v7  ;;  %v814_v35 = vsel %vm755_vm3, %v886_v34, 0.0 }
 0x1fc   :  { %905 = vpow2.f32 %v743_v8  ;;  %v772_v10 = vmul.f32 1.442695, %v771_v9 }
 0x1fe   :  { %907 = vpow2.f32 %v772_v10 }
 0x206   :  { %v906_v5 = vpop.eup %905 }
 0x207   :  { %v745_v11 = vadd.f32 1.0, %v906_v5  ;;  %v748_v15 = vmul.f32 -0.5, %v906_v5  ;;  %v751_v20 = vand.u32 2147483647, %v906_v5 }
 0x208   :  { %v908_v12 = vpop.eup %907 }
 0x209   :  { %v774_v13 = vadd.f32 1.0, %v908_v12  ;;  %909 = vlog2.f32 %v745_v11  ;;  %v777_v14 = vmul.f32 -0.5, %v908_v12  ;;  %v749_v17 = vadd.f32 1.0, %v748_v15 }
 0x20a   :  { %v780_v19 = vand.u32 2147483647, %v908_v12  ;;  %vm752_vm6 = vcmp.lt.f32.partialorder %v751_v20, 0.0004427343 }
 0x20b   :  { %911 = vlog2.f32 %v774_v13  ;;  %v778_v16 = vadd.f32 1.0, %v777_v14  ;;  %v750_v25 = vmul.f32 %v906_v5, %v749_v17 }
 0x20c   :  { %vm781_vm5 = vcmp.lt.f32.partialorder %v780_v19, 0.0004427343 }
 0x20d   :  { %v779_v24 = vmul.f32 %v908_v12, %v778_v16 }
 0x213   :  { %v910_v18 = vpop.eup %909 }
 0x214   :  { %v747_v21 = vmul.f32 0.6931472, %v910_v18 }
 0x215   :  { %v912_v22 = vpop.eup %911 }
 0x216   :  { %v776_v23 = vmul.f32 0.6931472, %v912_v22  ;;  %v753_v28 = vsel %vm752_vm6, %v750_v25, %v747_v21 }
 0x217   :  { %v754_v32 = vadd.f32 %v753_v28, %v740_v30 }
 0x218   :  { %v782_v27 = vsel %vm781_vm5, %v779_v24, %v776_v23 }
 0x219   :  { %v783_v29 = vadd.f32 %v782_v27, %v769_v26  ;;  %v756_v33 = vsel %vm755_vm3, %v754_v32, 0.0 }
 0x21b   :  { %v784_v31 = vsel %vm755_vm3, %v783_v29, 0.0 }
 0x21c   :  { %785 = vadd.xlane.f32.xlu1 %v784_v31 }
 0x220   :  { %757 = vadd.xlane.f32.xlu1 %v756_v33 }
 0x224   :  { %815 = vadd.xlane.f32.xlu1 %v814_v35 }
 0x284   :  { %v806_v36 = vpop.xlane.xlu0 %805 }
 0x285   :  { %v807_v37 = vrot.slane %v806_v36, 4 }
 0x287   :  { %v808_v39 = vadd.f32 %v807_v37, %v806_v36 }
 0x289   :  { %v809_v43 = vrot.slane %v808_v39, 2 }
 0x28b   :  { %v810_v49 = vadd.f32 %v809_v43, %v808_v39 }
 0x28d   :  { %v811_v56 = vrot.slane %v810_v49, 1 }
 0x28f   :  { %v812_v60 = vadd.f32 %v811_v56, %v810_v49 }
 0x2a9   :  { %v786_v38 = vpop.xlane.xlu1 %785 }
 0x2aa   :  { %v787_v40 = vrot.slane %v786_v38, 4 }
 0x2ac   :  { %v788_v41 = vadd.f32 %v787_v40, %v786_v38 }
 0x2ad   :  { %v758_v42 = vpop.xlane.xlu1 %757 }
 0x2ae   :  { %v789_v44 = vrot.slane %v788_v41, 2  ;;  %v759_v45 = vrot.slane %v758_v42, 4 }
 0x2b0   :  { %v760_v46 = vadd.f32 %v759_v45, %v758_v42  ;;  %v790_v48 = vadd.f32 %v789_v44, %v788_v41 }
 0x2b1   :  { %v816_v47 = vpop.xlane.xlu1 %815 }
 0x2b2   :  { %v761_v50 = vrot.slane %v760_v46, 2  ;;  %v817_v51 = vrot.slane %v816_v47, 4  ;;  %v791_v53 = vrot.slane %v790_v48, 1 }
 0x2b4   :  { %v818_v2 = vadd.f32 %v817_v51, %v816_v47  ;;  %v762_v52 = vadd.f32 %v761_v50, %v760_v46  ;;  %v792_v59 = vadd.f32 %v791_v53, %v790_v48 }
 0x2b6   :  { %v819_v54 = vrot.slane %v818_v2, 2  ;;  %v763_v55 = vrot.slane %v762_v52, 1 }
 0x2b8   :  { %v820_v57 = vadd.f32 %v819_v54, %v818_v2  ;;  %v764_v58 = vadd.f32 %v763_v55, %v762_v52 }
 0x2ba   :  { %887 = vpush %v764_v58  ;;  %v821_v61 = vrot.slane %v820_v57, 1 }
 0x2bb   :  { %889 = vpush %v792_v59 }
 0x2bc   :  { %891 = vpush %v812_v60  ;;  %v822_v62 = vadd.f32 %v821_v61, %v820_v57 }
 0x2be   :  { %893 = vpush %v822_v62 }
 0x2eb   :  { %s888_s3 = spop %887 }
 0x2ec   :  { %s768_s4 = smul.f32 0.5, %s888_s3  ;;  %s890_s9 = spop %889 }
 0x2ed   :  { %s796_s10 = smul.f32 0.5, %s890_s9  ;;  %s892_s11 = spop %891 }
 0x2ee   :  { %831 = sst [smem:[#allocation11 + $0x1]] %s768_s4 }
 0x2ef   :  { %s797_s12 = sadd.f32 %s796_s10, %s768_s4  ;;  %s894_s13 = spop %893 }
 0x2f0   :  { %833 = sst [smem:[#allocation11 + $0x2]] %s796_s10 }
 0x2f1   :  { %829 = sst [smem:[#allocation11]] %s797_s12 }
 0x2f2   :  { %s824_s14 = sadd.f32 %s894_s13, %s892_s11 }
 0x2f4   :  { %s827_s1 = smul.f32 0.25, %s824_s14 }
 0x2f6   :  { %835 = sst [smem:[#allocation11 + $0x3]] %s827_s1 }
 0x2f7   :  { %988 = shalt.err (!%p985_p12)
}
 0x2f8   :  { %s1002_s23 = smov [#allocation11]  }
 0x2f9   :  { %843 = dma.smem_to_hbm %s1002_s23, 16, %s1143_s5, [#allocation7]  }
 0x2fa   :  { %993 = dma.done.wait [#allocation7], 16  }
 0x2fb   :  { %994 = vsyncadd [#allocation7], 4294967280 }
 0x2fc   :  { %847 = sfence }
 0x2fd   :  { %848 = vsyncpa [#allocation6], 1 }
 0x2fe   :  { %849 = vsyncpa [#allocation9], 1 }
 0x2ff   :  { %850 = vsyncpa [#allocation7], 1 }

</bundles_post_ra>
